<compile_context>
chip_gen: v7x
topology: tpu7x:2x2x1
jax: 0.10.0
libtpu: 0.0.40
codegen_flags: <defaults>
</compile_context>

<pallas_src>
import functools

import jax
import jax.numpy as jnp
from jax import lax
from jax.experimental import pallas as pl
from jax.experimental.pallas import tpu as pltpu


def _wce_kernel(logits_ref, labels_ref, wmap_ref, out_ref, *,
                ignore_id: int, hw: int, tile_hw: int, tiles_per_part: int):
    p = pl.program_id(1)          # spatial partition (parallel)
    j = pl.program_id(2)          # HW tile within partition (reduction axis)

    @pl.when(j == 0)
    def _():
        out_ref[...] = jnp.zeros_like(out_ref)

    x = logits_ref[...].astype(jnp.float32)     # (C, T): classes on sublanes
    lbl = labels_ref[...]                       # (1, T) int32
    w_t = wmap_ref[...]                         # (1, T) f32 per-pixel weight

    c, t = x.shape

    # numerically-stable log-sum-exp over the class (sublane) axis
    m = jnp.max(x, axis=0, keepdims=True)                               # (1, T)
    lse = m + jnp.log(jnp.sum(jnp.exp(x - m), axis=0, keepdims=True))   # (1, T)

    # target logit via bool-mask select (no float onehot / no MXU)
    onehot = lax.broadcasted_iota(jnp.int32, (c, t), 0) == lbl
    x_t = jnp.sum(jnp.where(onehot, x, 0.0), axis=0, keepdims=True)     # (1, T)

    loss_term = lse - x_t
    valid_lbl = lbl != ignore_id

    tile_idx = p * tiles_per_part + j           # logical HW tile index
    tile_start = tile_idx * tile_hw
    row = lax.broadcasted_iota(jnp.int32, (2, 128), 0)

    def _accumulate(valid, tile_is_full: bool):
        wv = jnp.where(valid, w_t, 0.0)
        if tile_is_full:
            lv = wv * loss_term                 # no garbage lanes on full tiles
        else:
            # where(), not multiply: 0 * NaN from OOB tail lanes would be NaN
            lv = jnp.where(valid, w_t * loss_term, 0.0)
        # fold this tile to two scalars (cross-lane reduce on the idle XLU)
        # and accumulate into the resident (2, 128) output block.
        out_ref[...] += jnp.where(row == 0, jnp.sum(lv), jnp.sum(wv))

    is_full = (tile_start + tile_hw) <= hw      # scalar, per grid step

    @pl.when(is_full)
    def _():
        _accumulate(valid_lbl, True)

    @pl.when(jnp.logical_not(is_full))
    def _():
        lane = lax.broadcasted_iota(jnp.int32, (1, t), 1)
        in_bounds = (tile_start + lane) < hw
        _accumulate(jnp.logical_and(valid_lbl, in_bounds), False)


def weighted_cross_entropy_loss(logits_nchw, labels_nhw, weights=None,
                                ignore_id: int = 0, tile_hw: int | None = None):
    """Equivalent of F.cross_entropy(logits, labels, weight=weights,
    ignore_index=ignore_id, reduction='mean').

    Notes:
      * ignore_id defaults to 0 to match the PyTorch module (torch's own
        F.cross_entropy default is -100) -- pass it explicitly when porting.
      * labels outside [0, C) that are not ignore_id contribute nothing to the
        numerator or denominator (torch would raise).
      * If every pixel has label == ignore_id the result is NaN (as in torch).
    """
    n, c, h, wd = logits_nchw.shape
    hw = h * wd

    # contiguous reshapes only -- no transpose, no padding
    logits_3d = logits_nchw.reshape(n, c, hw)
    labels_3d = labels_nhw.reshape(n, 1, hw).astype(jnp.int32)

    if weights is None:
        w_vec = jnp.ones((c,), jnp.float32)
    else:
        w_vec = jnp.asarray(weights, jnp.float32).reshape(c)

    # per-pixel target-class weight map (XLA gather); zero for labels outside
    # [0, C) so they silently contribute nothing (same behaviour as the
    # onehot-select they replace).
    in_range = jnp.logical_and(labels_3d >= 0, labels_3d < c)
    w_map = jnp.where(in_range, w_vec[jnp.clip(labels_3d, 0, c - 1)],
                      jnp.float32(0.0))

    # Tile sizing: ~8 MiB of HBM per logits block (actual dtype itemsize),
    # capped at a ~6 MiB f32 upcast working set so double-buffered inputs plus
    # (C,T) temporaries fit v7x's 64 MiB VMEM.
    if tile_hw is None:
        itemsize = logits_3d.dtype.itemsize
        elems = min((8 << 20) // (itemsize * c), (6 << 20) // (4 * c))
        tile_hw = max(128, (elems // 128) * 128)
    if tile_hw >= hw:
        tile_hw = hw                  # single full-dim block (always legal)
        n_tiles = 1
    else:
        tile_hw = max(128, (tile_hw // 128) * 128)
        n_tiles = pl.cdiv(hw, tile_hw)

    # Spatial "parallel" split so both v7x TensorCores have work at small N;
    # a no-op (unit grid dim) when there is only one tile, and harmless on the
    # single-TensorCore v5e/v6e.
    part = 2 if n_tiles >= 2 else 1
    tiles_per_part = pl.cdiv(n_tiles, part)

    kernel = functools.partial(_wce_kernel, ignore_id=int(ignore_id), hw=hw,
                               tile_hw=tile_hw, tiles_per_part=tiles_per_part)

    def hw_block(i, p, j):
        # Clamp: the last partition may own one or two out-of-range logical
        # tile ids (fully masked in-kernel); never DMA past the array end.
        return (i, 0, jnp.minimum(p * tiles_per_part + j, n_tiles - 1))

    out = pl.pallas_call(
        kernel,
        out_shape=jax.ShapeDtypeStruct((n, part, 2, 128), jnp.float32),
        grid_spec=pltpu.PrefetchScalarGridSpec(
            num_scalar_prefetch=0,
            grid=(n, part, tiles_per_part),
            in_specs=[
                pl.BlockSpec((None, c, tile_hw), hw_block),   # logits
                pl.BlockSpec((None, 1, tile_hw), hw_block),   # labels
                pl.BlockSpec((None, 1, tile_hw), hw_block),   # per-pixel weight
            ],
            out_specs=pl.BlockSpec((None, None, 2, 128),
                                   lambda i, p, j: (i, p, 0, 0)),
        ),
        compiler_params=pltpu.CompilerParams(
            dimension_semantics=("parallel", "parallel", "arbitrary"),
            vmem_limit_bytes=48 * 1024 * 1024),
    )(logits_3d, labels_3d, w_map)

    loss_sum = jnp.sum(out[:, :, 0, 0])
    wsum = jnp.sum(out[:, :, 1, 0])
    # NOTE: matches torch -- NaN if every pixel has label == ignore_id.
    return loss_sum / wsum


class WeightedCrossEntropyLoss:
    """Mirror of the PyTorch module (reduction='mean')."""

    def __init__(self, num_classes: int = 2, ignore_id: int = 0,
                 print_step: int = 20, weights=None):
        self.num_classes = num_classes
        self.ignore_id = ignore_id
        self.print_step = print_step
        self.print_counter = 0
        self.weights = weights

    def __call__(self, logits, labels, **kwargs):
        loss = weighted_cross_entropy_loss(logits, labels, self.weights,
                                           ignore_id=self.ignore_id)
        # TODO(synk): periodic host-side loss printing omitted (keeps stdout clean).
        self.print_counter += 1
        return loss


def _reference_loss(logits_nchw, labels_nhw, weights, ignore_id=0):
    # plain-JAX reference of torch.nn.functional.cross_entropy semantics
    n, c, h, wd = logits_nchw.shape
    x = jnp.transpose(logits_nchw, (0, 2, 3, 1)).reshape(-1, c).astype(jnp.float32)
    y = labels_nhw.reshape(-1).astype(jnp.int32)
    lse = jax.nn.logsumexp(x, axis=-1)
    x_t = jnp.take_along_axis(x, y[:, None], axis=-1)[:, 0]
    w_t = jnp.asarray(weights, jnp.float32)[y]
    valid = (y != ignore_id).astype(jnp.float32)
    return jnp.sum(valid * w_t * (lse - x_t)) / jnp.sum(valid * w_t)


if __name__ == "__main__":
    key = jax.random.PRNGKey(0)
    k_logits, k_labels, k_logits2, k_labels2 = jax.random.split(key, 4)

    # Case 1: module-consistent small shapes -- batch=2, classes=4, 16x16.
    N, C, H, W = 2, 4, 16, 16
    ignore_id = 0   # module default (torch's F.cross_entropy default is -100)

    logits = jax.random.normal(k_logits, (N, C, H, W), dtype=jnp.float32)
    labels = jax.random.randint(k_labels, (N, H, W), 0, C, dtype=jnp.int32)
    weights = jnp.array([1.0, 2.0, 0.5, 1.5], dtype=jnp.float32)

    loss_mod = WeightedCrossEntropyLoss(num_classes=C, ignore_id=ignore_id,
                                        weights=weights)
    loss = loss_mod(logits, labels)
    jax.block_until_ready(loss)
    ref = _reference_loss(logits, labels, weights, ignore_id=ignore_id)
    assert jnp.allclose(loss, ref, rtol=1e-5, atol=1e-5), (loss, ref)

    # Case 1b: bf16 logits at the boundary (HBM-halving path on v5e/v6e);
    # in-kernel math stays f32.
    loss_bf16 = weighted_cross_entropy_loss(logits.astype(jnp.bfloat16), labels,
                                            weights, ignore_id=ignore_id)
    jax.block_until_ready(loss_bf16)
    ref_bf16 = _reference_loss(logits.astype(jnp.bfloat16), labels, weights,
                               ignore_id=ignore_id)
    assert jnp.allclose(loss_bf16, ref_bf16, rtol=1e-3, atol=1e-3), (loss_bf16, ref_bf16)

    # Case 2: forced small tile (128) on a non-multiple HW (20*16 = 320) to
    # exercise multi-tile accumulation, the 2-way spatial split, the clamped
    # out-of-range tile of the last partition, and the tail-lane mask.
    N2, C2, H2, W2 = 2, 4, 20, 16
    logits2 = jax.random.normal(k_logits2, (N2, C2, H2, W2), dtype=jnp.float32)
    labels2 = jax.random.randint(k_labels2, (N2, H2, W2), 0, C2, dtype=jnp.int32)
    loss2 = weighted_cross_entropy_loss(logits2, labels2, weights,
                                        ignore_id=ignore_id, tile_hw=128)
    jax.block_until_ready(loss2)
    ref2 = _reference_loss(logits2, labels2, weights, ignore_id=ignore_id)
    assert jnp.allclose(loss2, ref2, rtol=1e-5, atol=1e-5), (loss2, ref2)

    print("KERNEL_OK")
</pallas_src>

<mosaic_0001>
module attributes {stable_mosaic.version = 11 : i64} {
  func.func @_wce_kernel(%arg0: i32, %arg1: i32, %arg2: i32, %arg3: memref<1x4x256xf32, #tpu.memory_space<vmem>>, %arg4: memref<1x1x256xi32, #tpu.memory_space<vmem>>, %arg5: memref<1x1x256xf32, #tpu.memory_space<vmem>>, %arg6: memref<1x1x2x128xf32, #tpu.memory_space<vmem>>) attributes {dimension_semantics = [#tpu.dimension_semantics<parallel>, #tpu.dimension_semantics<parallel>, #tpu.dimension_semantics<arbitrary>], iteration_bounds = array<i64: 2, 1, 1>, scalar_prefetch = 0 : i64, scratch_operands = 0 : i64, tpu.core_type = #tpu.core_type<tc>, window_params = [{transform_indices = @transform_0, window_bounds = array<i64: 1, 4, 256>}, {transform_indices = @transform_1, window_bounds = array<i64: 1, 1, 256>}, {transform_indices = @transform_2, window_bounds = array<i64: 1, 1, 256>}, {transform_indices = @transform_3, window_bounds = array<i64: 1, 1, 2, 128>}]} {
    %c0_i32 = arith.constant 0 : i32
    %0 = arith.cmpi eq, %arg2, %c0_i32 : i32
    %1 = arith.extui %0 : i1 to i32
    %c0_i32_0 = arith.constant 0 : i32
    %2 = arith.cmpi ne, %1, %c0_i32_0 : i32
    scf.if %2 {
      %cst_17 = arith.constant 0.000000e+00 : f32
      %39 = vector.broadcast %cst_17 : f32 to vector<2x128xf32>
      %c0_18 = arith.constant 0 : index
      %c0_19 = arith.constant 0 : index
      %c0_20 = arith.constant 0 : index
      %c0_21 = arith.constant 0 : index
      %40 = vector.load %arg6[%c0_18, %c0_19, %c0_20, %c0_21] : memref<1x1x2x128xf32, #tpu.memory_space<vmem>>, vector<1x1x2x128xf32>
      %41 = vector.shape_cast %40 : vector<1x1x2x128xf32> to vector<2x128xf32>
      %42 = vector.shape_cast %39 : vector<2x128xf32> to vector<1x1x2x128xf32>
      tpu.vector_store %arg6[%c0_18, %c0_19, %c0_20, %c0_21], %42 {strides = array<i32>} : memref<1x1x2x128xf32, #tpu.memory_space<vmem>>, vector<1x1x2x128xf32>,
    } else {
    }
    %c0 = arith.constant 0 : index
    %c0_1 = arith.constant 0 : index
    %c0_2 = arith.constant 0 : index
    %3 = vector.load %arg3[%c0, %c0_1, %c0_2] : memref<1x4x256xf32, #tpu.memory_space<vmem>>, vector<1x4x256xf32>
    %4 = vector.shape_cast %3 : vector<1x4x256xf32> to vector<4x256xf32>
    %c0_3 = arith.constant 0 : index
    %c0_4 = arith.constant 0 : index
    %c0_5 = arith.constant 0 : index
    %5 = vector.load %arg4[%c0_3, %c0_4, %c0_5] : memref<1x1x256xi32, #tpu.memory_space<vmem>>, vector<1x1x256xi32>
    %6 = vector.shape_cast %5 : vector<1x1x256xi32> to vector<1x256xi32>
    %c0_6 = arith.constant 0 : index
    %c0_7 = arith.constant 0 : index
    %c0_8 = arith.constant 0 : index
    %7 = vector.load %arg5[%c0_6, %c0_7, %c0_8] : memref<1x1x256xf32, #tpu.memory_space<vmem>>, vector<1x1x256xf32>
    %8 = vector.shape_cast %7 : vector<1x1x256xf32> to vector<1x256xf32>
    %cst = arith.constant dense<0xFF800000> : vector<256xf32>
    %9 = vector.multi_reduction <maximumf>, %4, %cst [0] : vector<4x256xf32> to vector<256xf32>
    %10 = vector.shape_cast %9 : vector<256xf32> to vector<1x256xf32>
    %11 = vector.broadcast %10 : vector<1x256xf32> to vector<4x256xf32>
    %12 = arith.subf %4, %11 : vector<4x256xf32>
    %13 = math.exp %12 : vector<4x256xf32>
    %cst_9 = arith.constant dense<0.000000e+00> : vector<256xf32>
    %14 = vector.multi_reduction <add>, %13, %cst_9 [0] : vector<4x256xf32> to vector<256xf32>
    %15 = vector.shape_cast %14 : vector<256xf32> to vector<1x256xf32>
    %16 = math.log %15 : vector<1x256xf32>
    %17 = arith.addf %10, %16 : vector<1x256xf32>
    %18 = tpu.iota {dimensions = array<i32: 0>} : vector<4x256xi32>
    %19 = vector.broadcast %6 : vector<1x256xi32> to vector<4x256xi32>
    %20 = arith.cmpi eq, %18, %19 : vector<4x256xi32>
    %cst_10 = arith.constant 0.000000e+00 : f32
    %21 = vector.broadcast %cst_10 : f32 to vector<4x256xf32>
    %22 = arith.select %20, %4, %21 : vector<4x256xi1>, vector<4x256xf32>
    %cst_11 = arith.constant dense<0.000000e+00> : vector<256xf32>
    %23 = vector.multi_reduction <add>, %22, %cst_11 [0] : vector<4x256xf32> to vector<256xf32>
    %24 = vector.shape_cast %23 : vector<256xf32> to vector<1x256xf32>
    %25 = arith.subf %17, %24 : vector<1x256xf32>
    %c0_i32_12 = arith.constant 0 : i32
    %26 = vector.broadcast %c0_i32_12 : i32 to vector<1x256xi32>
    %27 = arith.cmpi ne, %6, %26 : vector<1x256xi32>
    %c1_i32 = arith.constant 1 : i32
    %28 = arith.muli %arg1, %c1_i32 : i32
    %29 = arith.addi %28, %arg2 : i32
    %c256_i32 = arith.constant 256 : i32
    %30 = arith.muli %29, %c256_i32 : i32
    %31 = tpu.iota {dimensions = array<i32: 0>} : vector<2x128xi32>
    %c256_i32_13 = arith.constant 256 : i32
    %32 = arith.addi %30, %c256_i32_13 : i32
    %c256_i32_14 = arith.constant 256 : i32
    %33 = arith.cmpi sle, %32, %c256_i32_14 : i32
    %34 = arith.extui %33 : i1 to i32
    %c0_i32_15 = arith.constant 0 : i32
    %35 = arith.cmpi ne, %34, %c0_i32_15 : i32
    scf.if %35 {
      %cst_17 = arith.constant 0.000000e+00 : f32
      %39 = vector.broadcast %cst_17 : f32 to vector<1x256xf32>
      %40 = arith.select %27, %8, %39 : vector<1x256xi1>, vector<1x256xf32>
      %41 = arith.mulf %40, %25 : vector<1x256xf32>
      %c0_18 = arith.constant 0 : index
      %c0_19 = arith.constant 0 : index
      %c0_20 = arith.constant 0 : index
      %c0_21 = arith.constant 0 : index
      %42 = vector.load %arg6[%c0_18, %c0_19, %c0_20, %c0_21] : memref<1x1x2x128xf32, #tpu.memory_space<vmem>>, vector<1x1x2x128xf32>
      %43 = vector.shape_cast %42 : vector<1x1x2x128xf32> to vector<2x128xf32>
      %c0_i32_22 = arith.constant 0 : i32
      %44 = vector.broadcast %c0_i32_22 : i32 to vector<2x128xi32>
      %45 = arith.cmpi eq, %31, %44 : vector<2x128xi32>
      %46 = vector.shape_cast %41 : vector<1x256xf32> to vector<1x1x256xf32>
      %cst_23 = arith.constant dense<0.000000e+00> : vector<1xf32>
      %47 = vector.multi_reduction <add>, %46, %cst_23 [1, 2] : vector<1x1x256xf32> to vector<1xf32>
      %48 = vector.shape_cast %47 : vector<1xf32> to vector<1x1x1xf32>
      %49 = vector.extract %48[0, 0, 0] : f32 from vector<1x1x1xf32>
      %50 = vector.shape_cast %40 : vector<1x256xf32> to vector<1x1x256xf32>
      %cst_24 = arith.constant dense<0.000000e+00> : vector<1xf32>
      %51 = vector.multi_reduction <add>, %50, %cst_24 [1, 2] : vector<1x1x256xf32> to vector<1xf32>
      %52 = vector.shape_cast %51 : vector<1xf32> to vector<1x1x1xf32>
      %53 = vector.extract %52[0, 0, 0] : f32 from vector<1x1x1xf32>
      %54 = vector.broadcast %49 : f32 to vector<2x128xf32>
      %55 = vector.broadcast %53 : f32 to vector<2x128xf32>
      %56 = arith.select %45, %54, %55 : vector<2x128xi1>, vector<2x128xf32>
      %57 = arith.addf %43, %56 : vector<2x128xf32>
      %c0_25 = arith.constant 0 : index
      %c0_26 = arith.constant 0 : index
      %c0_27 = arith.constant 0 : index
      %c0_28 = arith.constant 0 : index
      %58 = vector.load %arg6[%c0_25, %c0_26, %c0_27, %c0_28] : memref<1x1x2x128xf32, #tpu.memory_space<vmem>>, vector<1x1x2x128xf32>
      %59 = vector.shape_cast %58 : vector<1x1x2x128xf32> to vector<2x128xf32>
      %60 = vector.shape_cast %57 : vector<2x128xf32> to vector<1x1x2x128xf32>
      tpu.vector_store %arg6[%c0_25, %c0_26, %c0_27, %c0_28], %60 {strides = array<i32>} : memref<1x1x2x128xf32, #tpu.memory_space<vmem>>, vector<1x1x2x128xf32>,
    } else {
    }
    %true = arith.constant true
    %36 = arith.xori %33, %true : i1
    %37 = arith.extui %36 : i1 to i32
    %c0_i32_16 = arith.constant 0 : i32
    %38 = arith.cmpi ne, %37, %c0_i32_16 : i32
    scf.if %38 {
      %39 = tpu.iota {dimensions = array<i32: 1>} : vector<1x256xi32>
      %40 = vector.broadcast %30 : i32 to vector<1x256xi32>
      %41 = arith.addi %40, %39 : vector<1x256xi32>
      %c256_i32_17 = arith.constant 256 : i32
      %42 = vector.broadcast %c256_i32_17 : i32 to vector<1x256xi32>
      %43 = arith.cmpi slt, %41, %42 : vector<1x256xi32>
      %44 = arith.andi %27, %43 : vector<1x256xi1>
      %cst_18 = arith.constant 0.000000e+00 : f32
      %45 = vector.broadcast %cst_18 : f32 to vector<1x256xf32>
      %46 = arith.select %44, %8, %45 : vector<1x256xi1>, vector<1x256xf32>
      %47 = arith.mulf %8, %25 : vector<1x256xf32>
      %cst_19 = arith.constant 0.000000e+00 : f32
      %48 = vector.broadcast %cst_19 : f32 to vector<1x256xf32>
      %49 = arith.select %44, %47, %48 : vector<1x256xi1>, vector<1x256xf32>
      %c0_20 = arith.constant 0 : index
      %c0_21 = arith.constant 0 : index
      %c0_22 = arith.constant 0 : index
      %c0_23 = arith.constant 0 : index
      %50 = vector.load %arg6[%c0_20, %c0_21, %c0_22, %c0_23] : memref<1x1x2x128xf32, #tpu.memory_space<vmem>>, vector<1x1x2x128xf32>
      %51 = vector.shape_cast %50 : vector<1x1x2x128xf32> to vector<2x128xf32>
      %c0_i32_24 = arith.constant 0 : i32
      %52 = vector.broadcast %c0_i32_24 : i32 to vector<2x128xi32>
      %53 = arith.cmpi eq, %31, %52 : vector<2x128xi32>
      %54 = vector.shape_cast %49 : vector<1x256xf32> to vector<1x1x256xf32>
      %cst_25 = arith.constant dense<0.000000e+00> : vector<1xf32>
      %55 = vector.multi_reduction <add>, %54, %cst_25 [1, 2] : vector<1x1x256xf32> to vector<1xf32>
      %56 = vector.shape_cast %55 : vector<1xf32> to vector<1x1x1xf32>
      %57 = vector.extract %56[0, 0, 0] : f32 from vector<1x1x1xf32>
      %58 = vector.shape_cast %46 : vector<1x256xf32> to vector<1x1x256xf32>
      %cst_26 = arith.constant dense<0.000000e+00> : vector<1xf32>
      %59 = vector.multi_reduction <add>, %58, %cst_26 [1, 2] : vector<1x1x256xf32> to vector<1xf32>
      %60 = vector.shape_cast %59 : vector<1xf32> to vector<1x1x1xf32>
      %61 = vector.extract %60[0, 0, 0] : f32 from vector<1x1x1xf32>
      %62 = vector.broadcast %57 : f32 to vector<2x128xf32>
      %63 = vector.broadcast %61 : f32 to vector<2x128xf32>
      %64 = arith.select %53, %62, %63 : vector<2x128xi1>, vector<2x128xf32>
      %65 = arith.addf %51, %64 : vector<2x128xf32>
      %c0_27 = arith.constant 0 : index
      %c0_28 = arith.constant 0 : index
      %c0_29 = arith.constant 0 : index
      %c0_30 = arith.constant 0 : index
      %66 = vector.load %arg6[%c0_27, %c0_28, %c0_29, %c0_30] : memref<1x1x2x128xf32, #tpu.memory_space<vmem>>, vector<1x1x2x128xf32>
      %67 = vector.shape_cast %66 : vector<1x1x2x128xf32> to vector<2x128xf32>
      %68 = vector.shape_cast %65 : vector<2x128xf32> to vector<1x1x2x128xf32>
      tpu.vector_store %arg6[%c0_27, %c0_28, %c0_29, %c0_30], %68 {strides = array<i32>} : memref<1x1x2x128xf32, #tpu.memory_space<vmem>>, vector<1x1x2x128xf32>,
    } else {
    }
    return
  }
  func.func @transform_0(%arg0: i32, %arg1: i32, %arg2: i32) -> (i32, i32, i32) {
    %c1_i32 = arith.constant 1 : i32
    %0 = arith.muli %arg1, %c1_i32 : i32
    %1 = arith.addi %0, %arg2 : i32
    %c0_i32 = arith.constant 0 : i32
    %2 = arith.minsi %1, %c0_i32 : i32
    %c0_i32_0 = arith.constant 0 : i32
    %c0_i32_1 = arith.constant 0 : i32
    return %arg0, %c0_i32_0, %2 : i32, i32, i32
  }
  func.func @transform_1(%arg0: i32, %arg1: i32, %arg2: i32) -> (i32, i32, i32) {
    %c1_i32 = arith.constant 1 : i32
    %0 = arith.muli %arg1, %c1_i32 : i32
    %1 = arith.addi %0, %arg2 : i32
    %c0_i32 = arith.constant 0 : i32
    %2 = arith.minsi %1, %c0_i32 : i32
    %c0_i32_0 = arith.constant 0 : i32
    %c0_i32_1 = arith.constant 0 : i32
    return %arg0, %c0_i32_0, %2 : i32, i32, i32
  }
  func.func @transform_2(%arg0: i32, %arg1: i32, %arg2: i32) -> (i32, i32, i32) {
    %c1_i32 = arith.constant 1 : i32
    %0 = arith.muli %arg1, %c1_i32 : i32
    %1 = arith.addi %0, %arg2 : i32
    %c0_i32 = arith.constant 0 : i32
    %2 = arith.minsi %1, %c0_i32 : i32
    %c0_i32_0 = arith.constant 0 : i32
    %c0_i32_1 = arith.constant 0 : i32
    return %arg0, %c0_i32_0, %2 : i32, i32, i32
  }
  func.func @transform_3(%arg0: i32, %arg1: i32, %arg2: i32) -> (i32, i32, i32, i32) {
    %c0_i32 = arith.constant 0 : i32
    %c0_i32_0 = arith.constant 0 : i32
    %c0_i32_1 = arith.constant 0 : i32
    return %arg0, %arg1, %c0_i32, %c0_i32_0 : i32, i32, i32, i32
  }
}

</mosaic_0001>

<bundles_post_ra>
// kernel: tpu_custom_call.1
= control target key start
LH: loop header
LB: loop body
LE: loop exit
PB: predicated region body
PF: predicated region fallthrough
CT: control target
= control target key end

     0   :  { %8 = vsyncpa [#allocation3], 0  ;;  %s1277_s0 = inlined_call_operand.hbm [shape: f32[2,4,256], index: 0, kind: input, shape index: {}]   ;;  %s1278_s1 = inlined_call_operand.hbm [shape: s32[2,1,256], index: 1, kind: input, shape index: {}]   ;;  %s1279_s2 = inlined_call_operand.vmem [shape: f32[2,1,256], index: 2, kind: input, shape index: {}]   ;;  %s1280_s3 = inlined_call_operand.hbm [shape: f32[2,1,2,128], index: 3, kind: output, shape index: {}]  }
   0x1   :  { %10 = vsyncpa [#allocation3 + $0x1], 0 }
   0x2   :  { %11 = vsyncpa [#allocation6], 0 }
   0x3   :  { %13 = vsyncpa [#allocation6 + $0x1], 0 }
   0x4   :  { %14 = vsyncpa [#allocation4], 0 }
   0x5   :  { %16 = vsyncpa [#allocation4 + $0x1], 0  ;;  %s1023_s12 = smov 0   ;;  %s1025_s13 = smov 0  }
   0x6   :  { %s1027_s14 = smov 0   ;;  %s1029_s15 = smov 0  }
   0x7   :  { %s1031_s16 = smov 0   ;;  %s1033_s17 = smov 0  }
   0x8 LB: > { %s749_s18 = sadd.s32 4294967295, %s996_s17   ;;  %s750_s19 = sadd.s32 4294967294, %s996_s17   ;;  %s996_s17 = sphi %s1033_s17, %s22_s17   ;;  %s992_s16 = sphi %s1031_s16, %s1300_s16   ;;  %s988_s15 = sphi %s1029_s15, %s1299_s15   ;;  %s984_s14 = sphi %s1027_s14, %s1298_s14   ;;  %s980_s13 = sphi %s1025_s13, %s1297_s13   ;;  %s976_s12 = sphi %s1023_s12, %s1296_s12  }
   0x9   : > { %s41_s20 = sadd.s32 1, %s992_s16  ;;  %s56_s21 = sadd.s32 1, %s984_s14 }
   0xa   : > { %p43_p0 = scmp.ge.s32.totalorder %s41_s20, 2  ;;  %p63_p1 = scmp.ne.s32.totalorder %s984_s14, %s980_s13 }
   0xb   : > { %p64_p2 = scmp.eq.s32.totalorder %s996_s17, 0  ;;  %p69_p3 = scmp.ne.s32.totalorder %s980_s13, %s976_s12 }
   0xc   : > { %s1302_s20 = smov (%p43_p0, %s41_s20), 0  ;;  %p70_p5 = scmp.eq.s32.totalorder %s749_s18, 0 }
   0xd   : > { %p1064_p4 = por %p64_p2, %p63_p1  ;;  %s51_s23 = ssub.s32 %s992_s16, %s1302_s20 }
   0xe   : > { %p163_p6 = scmp.eq.s32.totalorder %s749_s18, 1  ;;  %p54_p7 = scmp.eq.s32.totalorder %s51_s23, 0 }
   0xf   : > { %p1070_p8 = por %p70_p5, %p69_p3  ;;  %p169_p10 = scmp.eq.s32.totalorder %s750_s19, 1 }
  0x10   : > { %p1074_p9 = por %p163_p6, %p63_p1  ;;  %p791_p13 = scmp.lt.s32.totalorder %s996_s17, 2 }
  0x11   : > { %s1284_s24 = scalar_select %p1070_p8, 1, 0 }
  0x12   : > { %s1285_s25 = scalar_select %p1074_p9, 1, 0 }
  0x13   : > { %s1079_s26 = scalar_select %p54_p7, %s984_s14, %s56_s21  }
  0x14   : > { %p1081_p11 = por %p169_p10, %p69_p3  ;;  %s1088_s28 = sand.u32 1, %s984_s14  }
  0x15   : > { %s753_s29 = sshll.u32 %s1088_s28, 3  ;;  %s768_s30 = sshll.u32 %s992_s16, 7 }
  0x16   : > { %s1286_s27 = scalar_select %p1081_p11, 1, 0 }
  0x17   : > { %s1095_s6 = scalar_lea.hbm %s1277_s0, %s768_s30  ;;  %s193_s7 = scalar_lea.vmem [#allocation2], %s753_s29 }
  0x18   : > { %s206_s8 = sshll.u32 %s193_s7, 4  ;;  %p1101_p0 = pnand %p791_p13, %p1064_p4  ;;  %s1097_s8 = int_to_ptr.vmem [resolvable:$true] %s206_s8 }
  0x19   : > { %s190_s10 = scalar_lea.sflag [#allocation3], %s1088_s28  ;;  %s850_s11 = scalar_lea.hbm %s1095_s6, 128 }
  0x1a   : > { %p851_p3 = scmp.ne.s32.totalorder %s1095_s6, %s850_s11  ;;  %p852_p5 = pneg %p1101_p0 }
  0x1b   : > { %s855_s21 = scalar_lea.hbm %s1277_s0, 256  ;;  %p856_p4 = scmp.lt.u32.totalorder %s1095_s6, %s1277_s0 }
  0x1c   : > { %p853_p6 = pnand %p852_p5, %p851_p3  ;;  %p857_p10 = scmp.lt.u32.totalorder %s855_s21, %s850_s11 }
  0x1d   : > { %p859_p12 = scmp.lt.u32.totalorder %s850_s11, %s1095_s6 }
  0x1e   : > { %p854_p7 = pneg %p853_p6  ;;  %p858_p13 = por %p857_p10, %p856_p4 }
  0x20   : > { %p860_p1 = por %p859_p12, %p858_p13 }
  0x22   : > { %p861_p2 = pnand %p860_p1, %p854_p7 }
  0x24   : > { %864 = shalt.err (!%p861_p2)
}
  0x25   : > { %s865_s29 = scalar_lea.vmem %s1097_s8, 128  ;;  %s998_s30 = smov [#allocation2]  }
  0x26   : > { %p866_p3 = scmp.ne.s32.totalorder %s1097_s8, %s865_s29  ;;  %s870_s4 = sshll.u32 %s998_s30, 4  ;;  %s871_s4 = int_to_ptr.vmem [resolvable:$false] %s870_s4 }
  0x27   : > { %s872_s5 = scalar_lea.vmem %s871_s4, 256  ;;  %p873_p9 = scmp.lt.s32.totalorder %s1097_s8, %s871_s4 }
  0x28   : > { %p868_p6 = pnand %p866_p3, %p852_p5  ;;  %p874_p4 = scmp.lt.s32.totalorder %s872_s5, %s865_s29 }
  0x2a   : > { %p869_p11 = pneg %p868_p6  ;;  %p875_p10 = por %p874_p4, %p873_p9 }
  0x2c   : > { %p876_p12 = pnand %p875_p10, %p869_p11 }
  0x2e   : > { %879 = shalt.err (!%p876_p12)
}
  0x2f   : > { %783 = dma.hbm_to_vmem [thread:$0]  (!%p1101_p0), %s1095_s6, 128, %s1097_s8, %s190_s10  }
  0x30   : > { %p1288_p1 = scmp.lt.s32.totalorder %s996_s17, 3  ;;  %p1289_p2 = scmp.ge.s32.totalorder %s996_s17, 1 }
  0x31   : > { %s756_s11 = sshll.u32 %s1088_s28, 1  ;;  %s769_s18 = sshll.u32 %s992_s16, 5 }
  0x32   : > { %p1137_p7 = pnand %p1289_p2, %p1288_p1  ;;  %s1146_s22 = scalar_lea.hbm %s1278_s1, %s769_s18 }
  0x33   : > { %s217_s23 = scalar_lea.vmem [#allocation5], %s756_s11  ;;  %s214_s6 = scalar_lea.sflag [#allocation6], %s1088_s28 }
  0x34   : > { %s1290_s7 = scalar_select %p1137_p7, 1, 0 }
  0x35   : > { %s230_s29 = sshll.u32 %s217_s23, 4  ;;  %s880_s8 = scalar_lea.hbm %s1146_s22, 32  ;;  %s231_s29 = int_to_ptr.vmem [resolvable:$true] %s230_s29 }
  0x36   : > { %p881_p9 = scmp.ne.s32.totalorder %s1146_s22, %s880_s8  ;;  %s885_s4 = scalar_lea.hbm %s1278_s1, 64 }
  0x37   : > { %p886_p3 = scmp.lt.u32.totalorder %s1146_s22, %s1278_s1  ;;  %p887_p6 = scmp.lt.u32.totalorder %s885_s4, %s880_s8 }
  0x38   : > { %p883_p11 = pnand %p881_p9, %p852_p5  ;;  %p889_p10 = scmp.lt.u32.totalorder %s880_s8, %s1146_s22 }
  0x39   : > { %p888_p4 = por %p887_p6, %p886_p3 }
  0x3a   : > { %p884_p13 = pneg %p883_p11 }
  0x3b   : > { %p890_p12 = por %p889_p10, %p888_p4 }
  0x3d   : > { %p891_p1 = pnand %p890_p12, %p884_p13 }
  0x3f   : > { %894 = shalt.err (!%p891_p1)
}
  0x40   : > { %s895_s28 = scalar_lea.vmem %s231_s29, 32  ;;  %s999_s11 = smov [#allocation5]  }
  0x41   : > { %p896_p2 = scmp.ne.s32.totalorder %s231_s29, %s895_s28  ;;  %s900_s19 = sshll.u32 %s999_s11, 4  ;;  %s901_s19 = int_to_ptr.vmem [resolvable:$false] %s900_s19 }
  0x42   : > { %s902_s21 = scalar_lea.vmem %s901_s19, 64  ;;  %p903_p8 = scmp.lt.s32.totalorder %s231_s29, %s901_s19 }
  0x43   : > { %p898_p9 = pnand %p896_p2, %p852_p5  ;;  %p904_p7 = scmp.lt.s32.totalorder %s902_s21, %s895_s28 }
  0x45   : > { %p899_p11 = pneg %p898_p9  ;;  %p905_p3 = por %p904_p7, %p903_p8 }
  0x47   : > { %p906_p6 = pnand %p905_p3, %p899_p11 }
  0x49   : > { %909 = shalt.err (!%p906_p6)
}
  0x4a   : > { %786 = dma.hbm_to_vmem [thread:$0]  (!%p1101_p0), %s1146_s22, 32, %s231_s29, %s214_s6  }
  0x4b   : > { %p1291_p13 = scmp.ne.s32.totalorder %s1290_s7, 0 }
  0x4c   : > { %s1171_s23 = sand.u32 (!%p1291_p13), 1, %s980_s13   ;;  %p1292_p5 = scmp.ne.s32.totalorder (!%p1291_p13), %s1284_s24, 0 }
  0x4d   : > { %257 = sbr.rel (%p1291_p13) target bundleno = 392 (0x188), region = 32  ;;  %s760_s8 = sshll.u32 (!%p1291_p13), %s1171_s23, 3 }
  0x4e   : > { %s260_s10 = scalar_lea.sflag (!%p1291_p13), [#allocation3], %s1171_s23  ;;  %s263_s30 = scalar_lea.vmem (!%p1291_p13), [#allocation2], %s760_s8 }
  0x54   : > { %963 = dma.done.wait (%p1292_p5), %s260_s10, 128  }
  0x55   : > { %965 = vsyncadd (%p1292_p5), %s260_s10, 4294967168  ;;  %s761_s9 = sshll.u32 %s1171_s23, 1  ;;  %s269_s7 = scalar_lea.sflag [#allocation6], %s1171_s23 }
  0x56   : > { %s272_s22 = scalar_lea.vmem [#allocation5], %s761_s9 }
  0x57   : > { %967 = dma.done.wait (%p1292_p5), %s269_s7, 32  }
  0x58   : > { %969 = vsyncadd (%p1292_p5), %s269_s7, 4294967264  ;;  %vm345_vm0 = vcmask 1043456   ;;  %v339_v0 = vld [vmem:[%s263_s30] sm:$0xff]  ;;  %v390_v15 = vlaneseq  ;;  %v340_v22 = vld [vmem:[%s272_s22] sm:$0x3]  ;;  %p323_p8 = scmp.lt.s32.totalorder %s988_s15, 1 }
  0x59   : > { %v343_v1 = vcombine.high %v339_v0, %v339_v0  ;;  %v346_v2 = vsel %vm345_vm0, %v339_v0, -inf  ;;  %v1000_v56 = vmov 1966171168   ;;  %vm420_vm3 = vcmp.ne.s32.totalorder %v340_v22, 0  ;;  %s1217_s18 = scalar_lea.vmem [#allocation7], %s761_s9  ;;  %s765_s11 = sshll.u32 %s988_s15, 5 }
  0x5a   : > { %v347_v3 = vrot.slane %v346_v2, 4  ;;  %v1189_v18 = vshrl.u32 %v390_v15, 7  ;;  %s324_s24 = scalar_select %p323_p8, %s988_s15, 1  ;;  %v433_v57 = vunpack.c.l.s4 %v1000_v56  ;;  %vm461_vm4 = vcmask 1040384  }
  0x5b   : > { %v353_v4 = vsel %vm345_vm0, %v343_v1, -inf  ;;  %s623_s21 = sshll.u32 %s1217_s18, 4  ;;  %s1227_s30 = scalar_lea.hbm %s1280_s3, %s765_s11  ;;  %s1229_s21 = int_to_ptr.vmem [resolvable:$true] %s623_s21 }
  0x5c   : > { %v348_v5 = vmax.f32 %v346_v2, %v347_v3  ;;  %v354_v6 = vrot.slane %v353_v4, 4  ;;  %v1192_v21 = vsub.s32 0, %v1189_v18  ;;  %v1195_v23 = vsub.s32 1, %v1189_v18  ;;  %s763_s29 = sshll.u32 %s324_s24, 1  ;;  %s609_s9 = scalar_lea.sflag [#allocation4], %s1171_s23 }
  0x5d   : > { %s329_s5 = scalar_lea.vmem %s1279_s2, %s763_s29  ;;  %vm449_vm5 = vcmp.eq.s32.totalorder %v1189_v18, 0  ;;  %s910_s15 = scalar_lea.vmem %s1229_s21, 32 }
  0x5e   : > { %v349_v7 = vrot.slane %v348_v5, 2  ;;  %v355_v8 = vmax.f32 %v353_v4, %v354_v6  ;;  %v395_v24 = vrot.slane %v340_v22, %v1192_v21  ;;  %v399_v25 = vrot.slane %v340_v22, %v1195_v23  ;;  %v341_v6 = vld [vmem:[%s329_s5] sm:$0x3]  ;;  %p911_p0 = scmp.ne.s32.totalorder %s1229_s21, %s910_s15  ;;  %p1293_p7 = scmp.ne.s32.totalorder %s1285_s25, 0 }
  0x5f   : > { %s1002_s7 = smov [#allocation7]  }
  0x60   : > { %v350_v9 = vmax.f32 %v348_v5, %v349_v7  ;;  %v356_v10 = vrot.slane %v355_v8, 2  ;;  %vm400_vm1 = vcmp.eq.s32.totalorder %v1189_v18, %v395_v24  ;;  %vm401_vm2 = vcmp.eq.s32.totalorder %v1189_v18, %v399_v25  ;;  %p912_p4 = pnand %p911_p0, %p1293_p7  ;;  %s914_s22 = sshll.u32 %s1002_s7, 4  ;;  %s915_s22 = int_to_ptr.vmem [resolvable:$false] %s914_s22 }
  0x61   : > { %v402_v26 = vsel %vm400_vm1, %v339_v0, 0.0  ;;  %v403_v30 = vsel %vm401_vm2, %v343_v1, 0.0  ;;  %v434_v1 = vunpack.c.0.s8 %v433_v57  ;;  %v1001_v25 = vmov 0.0   ;;  %s916_s24 = scalar_lea.vmem %s915_s22, 64  ;;  %p917_p12 = scmp.lt.s32.totalorder %s1229_s21, %s915_s22 }
  0x62   : > { %v351_v11 = vrot.slane %v350_v9, 1  ;;  %v357_v12 = vmax.f32 %v355_v8, %v356_v10  ;;  %v404_v32 = vsel %vm345_vm0, %v402_v26, 0.0  ;;  %v411_v36 = vsel %vm345_vm0, %v403_v30, 0.0  ;;  %338 = vst [vmem:[%s1217_s18] sm:$0x3] %v1001_v25  ;;  %p913_p10 = pneg %p912_p4  ;;  %p918_p1 = scmp.lt.s32.totalorder %s916_s24, %s910_s15 }
  0x63   : > { %v405_v37 = vrot.slane %v404_v32, 4  ;;  %v412_v40 = vrot.slane %v411_v36, 4  ;;  %v437_v5 = vsub.s32 %v434_v1, %v1189_v18 }
  0x64   : > { %v352_v13 = vmax.f32 %v350_v9, %v351_v11  ;;  %v358_v14 = vrot.slane %v357_v12, 1  ;;  %v428_v9 = vsel %vm420_vm3, %v341_v6, 0.0  ;;  %p919_p2 = por %p918_p1, %p917_p12 }
  0x65   : > { %v406_v43 = vadd.f32 %v405_v37, %v404_v32  ;;  %v413_v46 = vadd.f32 %v412_v40, %v411_v36 }
  0x66   : > { %v359_v16 = vmax.f32 %v357_v12, %v358_v14  ;;  %v478_v12 = vrot.slane %v428_v9, %v1192_v21  ;;  %p920_p9 = pnand %p919_p2, %p913_p10 }
  0x67   : > { %v407_v49 = vrot.slane %v406_v43, 2  ;;  %v414_v51 = vrot.slane %v413_v46, 2 }
  0x68   : > { %v362_v17 = vcombine.low %v352_v13, %v359_v16 }
  0x69   : > { %v408_v52 = vadd.f32 %v407_v49, %v406_v43  ;;  %v415_v53 = vadd.f32 %v414_v51, %v413_v46 }
  0x6a   : > { %v364_v19 = vsub.f32 %v339_v0, %v362_v17 }
  0x6b   : > { %v409_v54 = vrot.slane %v408_v52, 1  ;;  %v416_v55 = vrot.slane %v415_v53, 1 }
  0x6c   : > { %v365_v20 = vmul.f32 1.442695, %v364_v19  ;;  %v485_v19 = vsel %vm461_vm4, %v478_v12, 0.0 }
  0x6d   : > { %v410_v60 = vadd.f32 %v409_v54, %v408_v52  ;;  %v417_v0 = vadd.f32 %v416_v55, %v415_v53 }
  0x6e   : > { %844 = vpow2.f32 %v365_v20 }
  0x78   : > { %v845_v27 = vpop.eup %844 }
  0x79   : > { %v368_v28 = vcombine.high %v845_v27, %v845_v27  ;;  %v370_v29 = vsel %vm345_vm0, %v845_v27, 0.0 }
  0x7a   : > { %v371_v31 = vrot.slane %v370_v29, 4 }
  0x7b   : > { %v377_v33 = vsel %vm345_vm0, %v368_v28, 0.0 }
  0x7c   : > { %v372_v34 = vadd.f32 %v371_v31, %v370_v29  ;;  %v378_v35 = vrot.slane %v377_v33, 4 }
  0x7e   : > { %v373_v38 = vrot.slane %v372_v34, 2  ;;  %v379_v39 = vadd.f32 %v378_v35, %v377_v33 }
  0x80   : > { %v374_v41 = vadd.f32 %v373_v38, %v372_v34  ;;  %v380_v42 = vrot.slane %v379_v39, 2  ;;  %v448_v38 = vld [vmem:[%s1217_s18] sm:$0x3] }
  0x82   : > { %v375_v44 = vrot.slane %v374_v41, 1  ;;  %v381_v45 = vadd.f32 %v380_v42, %v379_v39 }
  0x84   : > { %v376_v47 = vadd.f32 %v375_v44, %v374_v41  ;;  %v382_v48 = vrot.slane %v381_v45, 1 }
  0x86   : > { %v383_v50 = vadd.f32 %v382_v48, %v381_v45  ;;  %846 = vlog2.f32 %v376_v47 }
  0x88   : > { %848 = vlog2.f32 %v383_v50 }
  0x90   : > { %v847_v58 = vpop.eup %846 }
  0x91   : > { %v385_v59 = vmul.f32 0.6931472, %v847_v58 }
  0x92   : > { %v849_v61 = vpop.eup %848 }
  0x93   : > { %v387_v62 = vmul.f32 0.6931472, %v849_v61  ;;  %v388_v63 = vadd.f32 %v385_v59, %v352_v13  ;;  %v482_v13 = vrot.slane %v428_v9, %v1195_v23 }
  0x95   : > { %v389_v2 = vadd.f32 %v387_v62, %v359_v16  ;;  %v418_v3 = vsub.f32 %v388_v63, %v410_v60  ;;  %v486_v20 = vsel %vm461_vm4, %v482_v13, 0.0 }
  0x96   : > { %v487_v24 = vadd.f32 %v486_v20, %v485_v19 }
  0x97   : > { %v419_v4 = vsub.f32 %v389_v2, %v417_v0 }
  0x99   : > { %v431_v7 = vcombine.low %v418_v3, %v419_v4 }
  0x9b   : > { %v438_v8 = vrot.slane %v431_v7, %v437_v5 }
  0x9d   : > { %v445_v10 = vrot.slane %v438_v8, %v437_v5 }
  0x9f   : > { %v447_v11 = vmul.f32 %v445_v10, %v428_v9 }
  0xa1   : > { %v454_v14 = vrot.slane %v447_v11, %v1192_v21  ;;  %v458_v15 = vrot.slane %v447_v11, %v1195_v23 }
  0xa3   : > { %v462_v16 = vsel %vm461_vm4, %v454_v14, 0.0  ;;  %v463_v17 = vsel %vm461_vm4, %v458_v15, 0.0 }
  0xa4   : > { %v464_v22 = vadd.f32 %v463_v17, %v462_v16 }
  0xa6   : > { %465 = vadd.xlane.f32.xlu0 %v464_v22 }
  0xaa   : > { %488 = vadd.xlane.f32.xlu0 %v487_v24 }
 0x133   : > { %v466_v26 = vpop.xlane.xlu0 %465 }
 0x134   : > { %v467_v27 = vrot.slane %v466_v26, 4 }
 0x136   : > { %v468_v28 = vadd.f32 %v467_v27, %v466_v26 }
 0x137   : > { %v489_v21 = vpop.xlane.xlu0 %488 }
 0x138   : > { %v469_v23 = vrot.slane %v468_v28, 2  ;;  %v490_v29 = vrot.slane %v489_v21, 4 }
 0x13a   : > { %v491_v30 = vadd.f32 %v490_v29, %v489_v21  ;;  %v470_v31 = vadd.f32 %v469_v23, %v468_v28 }
 0x13c   : > { %v492_v32 = vrot.slane %v491_v30, 2  ;;  %v471_v33 = vrot.slane %v470_v31, 1 }
 0x13e   : > { %v493_v34 = vadd.f32 %v492_v32, %v491_v30  ;;  %v472_v35 = vadd.f32 %v471_v33, %v470_v31 }
 0x140   : > { %770 = vpush %v472_v35  ;;  %v494_v36 = vrot.slane %v493_v34, 1 }
 0x142   : > { %v495_v37 = vadd.f32 %v494_v36, %v493_v34 }
 0x144   : > { %772 = vpush %v495_v37 }
 0x171   : > { %s771_s28 = spop %770 }
 0x172   : > { %v497_v39 = vstv %s771_s28 }
 0x175   : > { %s773_s19 = spop %772 }
 0x176   : > { %v498_v40 = vstv %s773_s19 }
 0x177   : > { %v499_v41 = vsel %vm449_vm5, %v497_v39, %v498_v40 }
 0x178   : > { %v500_v42 = vadd.f32 %v499_v41, %v448_v38 }
 0x17a   : > { %501 = vst [vmem:[%s1217_s18] sm:$0x3] %v500_v42 }
 0x17b   : > { %923 = shalt.err (!%p920_p9)
}
 0x17c   : > { %s924_s23 = scalar_lea.hbm %s1227_s30, 32  ;;  %s928_s4 = scalar_lea.hbm %s1280_s3, 64 }
 0x17d   : > { %p925_p11 = scmp.ne.s32.totalorder %s1227_s30, %s924_s23  ;;  %p929_p13 = scmp.lt.u32.totalorder %s1227_s30, %s1280_s3 }
 0x17e   : > { %p930_p5 = scmp.lt.u32.totalorder %s928_s4, %s924_s23  ;;  %p932_p0 = scmp.lt.u32.totalorder %s924_s23, %s1227_s30 }
 0x17f   : > { %p926_p3 = pnand %p925_p11, %p1293_p7 }
 0x180   : > { %p931_p8 = por %p930_p5, %p929_p13 }
 0x181   : > { %p927_p6 = pneg %p926_p3 }
 0x182   : > { %p933_p4 = por %p932_p0, %p931_p8 }
 0x184   : > { %p934_p10 = pnand %p933_p4, %p927_p6 }
 0x186   : > { %937 = shalt.err (!%p934_p10)
}
 0x187   : > { %778 = dma.vmem_to_hbm [thread:$0]  (%p1293_p7), %s1229_s21, 32, %s1227_s30, %s609_s9  }
 0x188 PF: > { %s635_s28 = sand.u32 1, %s976_s12   ;;  %p1294_p12 = scmp.ne.s32.totalorder %s1286_s27, 0 }
 0x189   : > { %p1295_p1 = scmp.ge.s32.totalorder %s996_s17, 2  ;;  %s636_s11 = scalar_lea.sflag [#allocation4], %s635_s28 }
 0x18b   : > { %p788_p2 = pnand %p1295_p1, %p1294_p12 }
 0x18d   : > { %971 = dma.done.wait (!%p788_p2), %s636_s11, 32  }
 0x18e   : > { %973 = vsyncadd (!%p788_p2), %s636_s11, 4294967264  ;;  %s22_s17 = sadd.s32 1, %s996_s17   ;;  %s1296_s12 = smov %s980_s13 }
 0x18f   : > { %p19_p9 = scmp.ge.s32.totalorder %s22_s17, 4   ;;  %s1297_s13 = smov %s984_s14 }
 0x190   : > { %s1298_s14 = smov %s1079_s26  ;;  %s1299_s15 = smov %s992_s16 }
 0x191   : > { %s1300_s16 = smov %s1302_s20  ;;  %21 = sbr.rel (!%p19_p9) target bundleno = 8 (0x8), region = 105 }
 0x198   :  { %641 = vsyncpa [#allocation3], 1 }
 0x199   :  { %643 = vsyncpa [#allocation3 + $0x1], 1 }
 0x19a   :  { %644 = vsyncpa [#allocation6], 1 }
 0x19b   :  { %646 = vsyncpa [#allocation6 + $0x1], 1 }
 0x19c   :  { %647 = vsyncpa [#allocation4], 1 }
 0x19d   :  { %649 = vsyncpa [#allocation4 + $0x1], 1 }

</bundles_post_ra>
